<compile_context>
chip_gen: v7x
topology: tpu7x:2x2x1
jax: 0.10.0
libtpu: 0.0.40
codegen_flags: <defaults>
</compile_context>

<pallas_src>
import jax
import jax.numpy as jnp
from jax.experimental import pallas as pl
from jax.experimental.pallas import tpu as pltpu

LANE = 128


def _round_up(n, m):
    return ((n + m - 1) // m) * m


def _surrogate_categorical_kernel(x_ref, w1_ref, b1_ref, w2_ref, b2_ref, out_ref):
    # Layer 1: Linear + ReLU. Low-precision operands, f32 MXU accumulation.
    h = jnp.dot(x_ref[...], w1_ref[...], preferred_element_type=jnp.float32)
    h = jnp.maximum(h + b1_ref[...], 0.0)

    # Layer 2: Linear (activation_last=None -> identity). Padded category
    # columns carry a -1e30 bias so they behave like -inf logits below.
    z = jnp.dot(h.astype(w2_ref.dtype), w2_ref[...],
                preferred_element_type=jnp.float32)
    z = z + b2_ref[...]

    # Numerically stable log_softmax over the (padded) category axis.
    # exp(-1e30 - m) == 0, so padded columns contribute nothing to the sum.
    m = jnp.max(z, axis=1, keepdims=True)
    shifted = z - m
    lse = jnp.log(jnp.sum(jnp.exp(shifted), axis=1, keepdims=True))
    out_ref[...] = (shifted - lse).astype(out_ref.dtype)


def surrogate_categorical_forward(x, w1, b1, w2, b2, *,
                                  block_batch=512,
                                  matmul_dtype=jnp.bfloat16):
    """Returns the Categorical logits: log_softmax(ff(x)), shape (B, C).

    w1: (D_in, H), b1: (H,), w2: (H, C), b2: (C,)  (pre-transposed from
    PyTorch's (out, in) layout so the kernel does plain row-major matmuls).
    """
    batch = x.shape[0]
    x2d = x.reshape(batch, -1).astype(jnp.float32)
    d_in = x2d.shape[1]
    hidden = w1.shape[1]
    num_cat = w2.shape[1]

    # Lane-dense padded sizes for all feature dimensions.
    d_pad = _round_up(max(d_in, 1), LANE)
    h_pad = _round_up(max(hidden, 1), LANE)
    c_pad = _round_up(max(num_cat, 1), LANE)

    # Batch tile: multiple of the sublane pack for the matmul dtype
    # (16 rows for bf16, 8 for f32), capped for VMEM headroom on v7x.
    pack = 8 * (4 // jnp.dtype(matmul_dtype).itemsize)
    tb = min(block_batch, _round_up(batch, pack))
    tb = _round_up(tb, pack)
    b_pad = _round_up(batch, tb)
    grid = (b_pad // tb,)

    # One-time padding in the wrapper (zeros are inert through both matmuls:
    # padded hidden units see zero weights and zero bias -> relu(0) = 0).
    xp = jnp.zeros((b_pad, d_pad), matmul_dtype)
    xp = xp.at[:batch, :d_in].set(x2d.astype(matmul_dtype))
    w1p = jnp.zeros((d_pad, h_pad), matmul_dtype)
    w1p = w1p.at[:d_in, :hidden].set(w1.astype(matmul_dtype))
    b1p = jnp.zeros((1, h_pad), jnp.float32)
    b1p = b1p.at[:, :hidden].set(b1.reshape(1, hidden).astype(jnp.float32))
    w2p = jnp.zeros((h_pad, c_pad), matmul_dtype)
    w2p = w2p.at[:hidden, :num_cat].set(w2.astype(matmul_dtype))
    # Padded categories get a huge negative bias -> effectively -inf logits.
    b2p = jnp.full((1, c_pad), -1e30, jnp.float32)
    b2p = b2p.at[:, :num_cat].set(b2.reshape(1, num_cat).astype(jnp.float32))

    itemsize = jnp.dtype(matmul_dtype).itemsize
    cost = pl.CostEstimate(
        flops=2 * b_pad * d_pad * h_pad + 2 * b_pad * h_pad * c_pad,
        transcendentals=b_pad * c_pad + b_pad,
        bytes_accessed=(xp.size + w1p.size + w2p.size) * itemsize
        + (b1p.size + b2p.size) * 4 + b_pad * c_pad * 4,
    )

    out_padded = pl.pallas_call(
        _surrogate_categorical_kernel,
        out_shape=jax.ShapeDtypeStruct((b_pad, c_pad), jnp.float32),
        grid=grid,
        in_specs=[
            pl.BlockSpec((tb, d_pad), lambda i: (i, 0)),     # x tile per step
            pl.BlockSpec((d_pad, h_pad), lambda i: (0, 0)),  # resident weights
            pl.BlockSpec((1, h_pad), lambda i: (0, 0)),
            pl.BlockSpec((h_pad, c_pad), lambda i: (0, 0)),
            pl.BlockSpec((1, c_pad), lambda i: (0, 0)),
        ],
        out_specs=pl.BlockSpec((tb, c_pad), lambda i: (i, 0)),
        compiler_params=pltpu.CompilerParams(
            dimension_semantics=("parallel",)),
        cost_estimate=cost,
    )(xp, w1p, b1p, w2p, b2p)

    # Strip batch/category padding outside the kernel.
    return out_padded[:batch, :num_cat]


def _init_linear(key, fan_in, fan_out):
    # Deterministic init mimicking torch.nn.Linear default (U[-1/sqrt(fan_in), +]).
    kw, kb = jax.random.split(key)
    bound = 1.0 / jnp.sqrt(jnp.asarray(fan_in, jnp.float32))
    w = jax.random.uniform(kw, (fan_in, fan_out), jnp.float32, -bound, bound)
    b = jax.random.uniform(kb, (fan_out,), jnp.float32, -bound, bound)
    return w, b


if __name__ == "__main__":
    # Module config: input_shape=(4,4) -> input_dim=16, num_categories=10,
    # num_layers=2, hidden_dim=32.
    batch, d_in_shape, hidden, num_categories = 8, (4, 4), 32, 10
    d_in = d_in_shape[0] * d_in_shape[1]

    key = jax.random.PRNGKey(0)
    kx, k1, k2 = jax.random.split(key, 3)
    x = jax.random.normal(kx, (batch,) + d_in_shape, jnp.float32)
    w1, b1 = _init_linear(k1, d_in, hidden)
    w2, b2 = _init_linear(k2, hidden, num_categories)

    logits = surrogate_categorical_forward(x, w1, b1, w2, b2)
    logits = jax.block_until_ready(logits)

    # Reference in plain JAX using the same precision path
    # (bf16 matmul operands, f32 accumulation and f32 epilogue).
    x2d = x.reshape(batch, -1)
    h_ref = jnp.dot(x2d.astype(jnp.bfloat16), w1.astype(jnp.bfloat16),
                    preferred_element_type=jnp.float32) + b1
    h_ref = jnp.maximum(h_ref, 0.0)
    z_ref = jnp.dot(h_ref.astype(jnp.bfloat16), w2.astype(jnp.bfloat16),
                    preferred_element_type=jnp.float32) + b2
    ref = jax.nn.log_softmax(z_ref, axis=1)

    assert logits.shape == (batch, num_categories)
    assert jnp.all(jnp.isfinite(logits))
    assert jnp.allclose(logits, ref, atol=1e-3, rtol=1e-3)
    # Row sums of exp(log_softmax) must be ~1.
    assert jnp.allclose(jnp.sum(jnp.exp(logits), axis=1), 1.0, atol=1e-3)

    print("KERNEL_OK")
</pallas_src>

<mosaic_0001>
module attributes {stable_mosaic.version = 11 : i64} {
  func.func @_surrogate_categorical_kernel(%arg0: i32, %arg1: memref<16x128xbf16, #tpu.memory_space<vmem>>, %arg2: memref<128x128xbf16, #tpu.memory_space<vmem>>, %arg3: memref<1x128xf32, #tpu.memory_space<vmem>>, %arg4: memref<128x128xbf16, #tpu.memory_space<vmem>>, %arg5: memref<1x128xf32, #tpu.memory_space<vmem>>, %arg6: memref<16x128xf32, #tpu.memory_space<vmem>>) attributes {dimension_semantics = [#tpu.dimension_semantics<parallel>], iteration_bounds = array<i64: 1>, scalar_prefetch = 0 : i64, scratch_operands = 0 : i64, tpu.core_type = #tpu.core_type<tc>, window_params = [{transform_indices = @transform_0, window_bounds = array<i64: 16, 128>}, {pipeline_mode = #tpu.pipeline_mode<synchronous>, transform_indices = @transform_1, window_bounds = array<i64: 128, 128>}, {pipeline_mode = #tpu.pipeline_mode<synchronous>, transform_indices = @transform_2, window_bounds = array<i64: 1, 128>}, {pipeline_mode = #tpu.pipeline_mode<synchronous>, transform_indices = @transform_3, window_bounds = array<i64: 128, 128>}, {pipeline_mode = #tpu.pipeline_mode<synchronous>, transform_indices = @transform_4, window_bounds = array<i64: 1, 128>}, {transform_indices = @transform_5, window_bounds = array<i64: 16, 128>}]} {
    %c0 = arith.constant 0 : index
    %c0_0 = arith.constant 0 : index
    %0 = vector.load %arg1[%c0, %c0_0] : memref<16x128xbf16, #tpu.memory_space<vmem>>, vector<16x128xbf16>
    %c0_1 = arith.constant 0 : index
    %c0_2 = arith.constant 0 : index
    %1 = vector.load %arg2[%c0_1, %c0_2] : memref<128x128xbf16, #tpu.memory_space<vmem>>, vector<128x128xbf16>
    %cst = arith.constant dense<0.000000e+00> : vector<16x128xf32>
    %2 = tpu.matmul %0, %1, %cst {dimension_numbers = #tpu.dot_dimension_numbers<[1], [0], [0], [1], [0, 0, 1, 1], [], []>} : vector<16x128xbf16>, vector<128x128xbf16>, vector<16x128xf32> -> vector<16x128xf32>
    %c0_3 = arith.constant 0 : index
    %c0_4 = arith.constant 0 : index
    %3 = vector.load %arg3[%c0_3, %c0_4] : memref<1x128xf32, #tpu.memory_space<vmem>>, vector<1x128xf32>
    %4 = vector.broadcast %3 : vector<1x128xf32> to vector<16x128xf32>
    %5 = arith.addf %2, %4 : vector<16x128xf32>
    %cst_5 = arith.constant 0.000000e+00 : f32
    %6 = vector.broadcast %cst_5 : f32 to vector<16x128xf32>
    %7 = arith.maximumf %5, %6 : vector<16x128xf32>
    %8 = arith.truncf %7 : vector<16x128xf32> to vector<16x128xbf16>
    %c0_6 = arith.constant 0 : index
    %c0_7 = arith.constant 0 : index
    %9 = vector.load %arg4[%c0_6, %c0_7] : memref<128x128xbf16, #tpu.memory_space<vmem>>, vector<128x128xbf16>
    %cst_8 = arith.constant dense<0.000000e+00> : vector<16x128xf32>
    %10 = tpu.matmul %8, %9, %cst_8 {dimension_numbers = #tpu.dot_dimension_numbers<[1], [0], [0], [1], [0, 0, 1, 1], [], []>} : vector<16x128xbf16>, vector<128x128xbf16>, vector<16x128xf32> -> vector<16x128xf32>
    %c0_9 = arith.constant 0 : index
    %c0_10 = arith.constant 0 : index
    %11 = vector.load %arg5[%c0_9, %c0_10] : memref<1x128xf32, #tpu.memory_space<vmem>>, vector<1x128xf32>
    %12 = vector.broadcast %11 : vector<1x128xf32> to vector<16x128xf32>
    %13 = arith.addf %10, %12 : vector<16x128xf32>
    %cst_11 = arith.constant dense<0xFF800000> : vector<16xf32>
    %14 = vector.multi_reduction <maximumf>, %13, %cst_11 [1] : vector<16x128xf32> to vector<16xf32>
    %15 = vector.shape_cast %14 : vector<16xf32> to vector<16x1xf32>
    %16 = vector.broadcast %15 : vector<16x1xf32> to vector<16x128xf32>
    %17 = arith.subf %13, %16 : vector<16x128xf32>
    %18 = math.exp %17 : vector<16x128xf32>
    %cst_12 = arith.constant dense<0.000000e+00> : vector<16xf32>
    %19 = vector.multi_reduction <add>, %18, %cst_12 [1] : vector<16x128xf32> to vector<16xf32>
    %20 = vector.shape_cast %19 : vector<16xf32> to vector<16x1xf32>
    %21 = math.log %20 : vector<16x1xf32>
    %22 = vector.broadcast %21 : vector<16x1xf32> to vector<16x128xf32>
    %23 = arith.subf %17, %22 : vector<16x128xf32>
    %c0_13 = arith.constant 0 : index
    %c0_14 = arith.constant 0 : index
    %24 = vector.load %arg6[%c0_13, %c0_14] : memref<16x128xf32, #tpu.memory_space<vmem>>, vector<16x128xf32>
    tpu.vector_store %arg6[%c0_13, %c0_14], %23 {strides = array<i32>} : memref<16x128xf32, #tpu.memory_space<vmem>>, vector<16x128xf32>,
    return
  }
  func.func @transform_0(%arg0: i32) -> (i32, i32) {
    %c0_i32 = arith.constant 0 : i32
    %c0_i32_0 = arith.constant 0 : i32
    return %arg0, %c0_i32 : i32, i32
  }
  func.func @transform_1(%arg0: i32) -> (i32, i32) {
    %c0_i32 = arith.constant 0 : i32
    %c0_i32_0 = arith.constant 0 : i32
    %c0_i32_1 = arith.constant 0 : i32
    return %c0_i32, %c0_i32_0 : i32, i32
  }
  func.func @transform_2(%arg0: i32) -> (i32, i32) {
    %c0_i32 = arith.constant 0 : i32
    %c0_i32_0 = arith.constant 0 : i32
    %c0_i32_1 = arith.constant 0 : i32
    return %c0_i32, %c0_i32_0 : i32, i32
  }
  func.func @transform_3(%arg0: i32) -> (i32, i32) {
    %c0_i32 = arith.constant 0 : i32
    %c0_i32_0 = arith.constant 0 : i32
    %c0_i32_1 = arith.constant 0 : i32
    return %c0_i32, %c0_i32_0 : i32, i32
  }
  func.func @transform_4(%arg0: i32) -> (i32, i32) {
    %c0_i32 = arith.constant 0 : i32
    %c0_i32_0 = arith.constant 0 : i32
    %c0_i32_1 = arith.constant 0 : i32
    return %c0_i32, %c0_i32_0 : i32, i32
  }
  func.func @transform_5(%arg0: i32) -> (i32, i32) {
    %c0_i32 = arith.constant 0 : i32
    %c0_i32_0 = arith.constant 0 : i32
    return %arg0, %c0_i32 : i32, i32
  }
}

</mosaic_0001>

<bundles_post_ra>
// kernel: tpu_custom_call.1
= control target key start
LH: loop header
LB: loop body
LE: loop exit
PB: predicated region body
PF: predicated region fallthrough
CT: control target
= control target key end

     0   :  { %10 = vsyncpa [#allocation3], 0  ;;  %s654_s0 = inlined_call_operand.hbm [shape: bf16[16,128], index: 0, kind: input, shape index: {}]   ;;  %s655_s1 = inlined_call_operand.hbm [shape: bf16[128,128], index: 1, kind: input, shape index: {}]   ;;  %s656_s2 = inlined_call_operand.vmem [shape: f32[1,128], index: 2, kind: input, shape index: {}]   ;;  %s657_s3 = inlined_call_operand.hbm [shape: bf16[128,128], index: 3, kind: input, shape index: {}]   ;;  %s658_s4 = inlined_call_operand.vmem [shape: f32[1,128], index: 4, kind: input, shape index: {}]   ;;  %s659_s5 = inlined_call_operand.hbm [shape: f32[16,128], index: 5, kind: output, shape index: {}]  }
   0x1   :  { %11 = vsyncpa [#allocation6], 0 }
   0x2   :  { %12 = vsyncpa [#allocation4], 0  ;;  %s544_s18 = smov [#allocation5]   ;;  %s545_s20 = smov [#allocation2]  }
   0x3   :  { %s30_s19 = sshll.u32 %s544_s18, 4  ;;  %s18_s21 = sshll.u32 %s545_s20, 4  ;;  %s31_s19 = int_to_ptr.vmem [resolvable:$true] %s30_s19  ;;  %s584_s21 = int_to_ptr.vmem [resolvable:$true] %s18_s21 }
   0x4   :  { %s450_s24 = scalar_lea.hbm %s655_s1, 1024 }
   0x5   :  { %p451_p0 = scmp.ne.s32.totalorder %s655_s1, %s450_s24  ;;  %p454_p1 = scmp.lt.u32.totalorder %s450_s24, %s655_s1 }
   0x7   :  { %p456_p2 = pnand %p454_p1, %p451_p0 }
   0x9   :  { %459 = shalt.err (!%p456_p2)
}
   0xa   :  { %s460_s29 = scalar_lea.vmem %s31_s19, 1024  ;;  %p465_p4 = scmp.lt.s32.totalorder %s31_s19, %s31_s19 }
   0xb   :  { %p461_p3 = scmp.ne.s32.totalorder %s31_s19, %s460_s29  ;;  %p466_p5 = scmp.lt.s32.totalorder %s460_s29, %s460_s29 }
   0xd   :  { %p467_p6 = por %p466_p5, %p465_p4 }
   0xf   :  { %p468_p7 = pnand %p467_p6, %p461_p3 }
  0x11   :  { %471 = shalt.err (!%p468_p7)
}
  0x12   :  { %s546_s30 = smov 64   ;;  %s547_s6 = smov 4  }
  0x13   :  { %36 = dma.hbm_to_vmem [thread:$0]  %s655_s1, 1024, %s31_s19, [#allocation6], %s546_s30, %s546_s30, %s547_s6  }
  0x14   :  { %s472_s11 = scalar_lea.hbm %s654_s0, 128 }
  0x15   :  { %p473_p8 = scmp.ne.s32.totalorder %s654_s0, %s472_s11  ;;  %p476_p9 = scmp.lt.u32.totalorder %s472_s11, %s654_s0 }
  0x17   :  { %p478_p10 = pnand %p476_p9, %p473_p8 }
  0x19   :  { %481 = shalt.err (!%p478_p10)
}
  0x1a   :  { %s482_s16 = scalar_lea.vmem %s584_s21, 128  ;;  %p487_p12 = scmp.lt.s32.totalorder %s584_s21, %s584_s21 }
  0x1b   :  { %p483_p11 = scmp.ne.s32.totalorder %s584_s21, %s482_s16  ;;  %p488_p13 = scmp.lt.s32.totalorder %s482_s16, %s482_s16 }
  0x1d   :  { %p489_p0 = por %p488_p13, %p487_p12 }
  0x1f   :  { %p490_p1 = pnand %p489_p0, %p483_p11 }
  0x21   :  { %493 = shalt.err (!%p490_p1)
}
  0x22   :  { %24 = dma.hbm_to_vmem [thread:$0]  %s654_s0, 128, %s584_s21, [#allocation3], %s546_s30, %s546_s30, %s547_s6  }
  0x23   :  { %s548_s18 = smov [#allocation7]   ;;  %s494_s23 = scalar_lea.hbm %s657_s3, 1024 }
  0x24   :  { %s44_s19 = sshll.u32 %s548_s18, 4  ;;  %p495_p2 = scmp.ne.s32.totalorder %s657_s3, %s494_s23  ;;  %s45_s19 = int_to_ptr.vmem [resolvable:$true] %s44_s19 }
  0x25   :  { %p498_p3 = scmp.lt.u32.totalorder %s494_s23, %s657_s3 }
  0x27   :  { %p500_p4 = pnand %p498_p3, %p495_p2 }
  0x29   :  { %503 = shalt.err (!%p500_p4)
}
  0x2a   :  { %s504_s28 = scalar_lea.vmem %s45_s19, 1024  ;;  %p509_p6 = scmp.lt.s32.totalorder %s45_s19, %s45_s19 }
  0x2b   :  { %p505_p5 = scmp.ne.s32.totalorder %s45_s19, %s504_s28  ;;  %p510_p7 = scmp.lt.s32.totalorder %s504_s28, %s504_s28 }
  0x2d   :  { %p511_p8 = por %p510_p7, %p509_p6 }
  0x2f   :  { %p512_p9 = pnand %p511_p8, %p505_p5 }
  0x31   :  { %515 = shalt.err (!%p512_p9)
}
  0x32   :  { %50 = dma.hbm_to_vmem [thread:$0]  %s657_s3, 1024, %s45_s19, [#allocation6], %s546_s30, %s546_s30, %s547_s6  }
  0x33   :  { %538 = dma.done.wait [#allocation3], 128  }
  0x34   :  { %539 = vsyncadd [#allocation3], 4294967168 }
  0x35   :  { %540 = dma.done.wait [#allocation6], 2048  }
  0x36   :  { %541 = vsyncadd [#allocation6], 4294965248  ;;  %v549_v0 = vmov 0.0   ;;  %vm550_vm0 = vmmov 0   ;;  %v425_v1 = vld [vmem:[#allocation5] sm:$0xff]   ;;  %v426_v2 = vld [vmem:[#allocation5 + $0x8] sm:$0xff]  }
  0x37   :  { %375 = vmatprep.subr.bf16.mxu0 %v549_v0  ;;  %391 = vmatprep.mubr.msk.bf16.mxu0 %vm550_vm0, %v549_v0  ;;  %v427_v3 = vld [vmem:[#allocation5 + $0x10] sm:$0xff]   ;;  %v434_v4 = vld [vmem:[#allocation7] sm:$0xff]   ;;  %v428_v5 = vld [vmem:[#allocation5 + $0x18] sm:$0xff]  }
  0x38   :  { %395 = vmatprep.subr.bf16.mxu1 %v549_v0  ;;  %411 = vmatprep.mubr.msk.bf16.mxu1 %vm550_vm0, %v549_v0  ;;  %v435_v6 = vld [vmem:[#allocation7 + $0x8] sm:$0xff]   ;;  %v429_v7 = vld [vmem:[#allocation5 + $0x20] sm:$0xff]   ;;  %v436_v8 = vld [vmem:[#allocation7 + $0x10] sm:$0xff]  }
  0x39   :  { %376 = vmatpush3.bf16.msra.mxu0 %v425_v1  ;;  %396 = vmatpush3.bf16.msra.mxu1 %v434_v4  ;;  %v430_v9 = vld [vmem:[#allocation5 + $0x28] sm:$0xff]   ;;  %v437_v10 = vld [vmem:[#allocation7 + $0x18] sm:$0xff]   ;;  %v431_v11 = vld [vmem:[#allocation5 + $0x30] sm:$0xff]  }
  0x3a   :  { %377 = vmatprep.subr.bf16.mxu0 %v549_v0  ;;  %397 = vmatprep.subr.bf16.mxu1 %v549_v0  ;;  %v438_v12 = vld [vmem:[#allocation7 + $0x20] sm:$0xff]   ;;  %v432_v13 = vld [vmem:[#allocation5 + $0x38] sm:$0xff]   ;;  %v439_v14 = vld [vmem:[#allocation7 + $0x28] sm:$0xff]  }
  0x3b   :  { %v433_v15 = vld [vmem:[#allocation2] sm:$0xff]   ;;  %v440_v16 = vld [vmem:[#allocation7 + $0x30] sm:$0xff]  }
  0x3c   :  { %v441_v17 = vld [vmem:[#allocation7 + $0x38] sm:$0xff]  }
  0x3d   :  { %378 = vmatpush3.bf16.msra.mxu0 %v426_v2  ;;  %398 = vmatpush3.bf16.msra.mxu1 %v435_v6  ;;  %v338_v18 = vld [vmem:[%s656_s2] ss:$0 sm:$0xff]  ;;  %s551_s2 = smov [#allocation8]  }
  0x3e   :  { %379 = vmatprep.subr.bf16.mxu0 %v549_v0  ;;  %399 = vmatprep.subr.bf16.mxu1 %v549_v0  ;;  %v348_v28 = vld [vmem:[%s658_s4] ss:$0 sm:$0xff]  ;;  %s325_s4 = sshll.u32 %s551_s2, 4  ;;  %s326_s4 = int_to_ptr.vmem [resolvable:$true] %s325_s4 }
  0x3f   :  { %s516_s7 = scalar_lea.vmem %s326_s4, 256  ;;  %p521_p11 = scmp.lt.s32.totalorder %s326_s4, %s326_s4 }
  0x40   :  { %p517_p10 = scmp.ne.s32.totalorder %s326_s4, %s516_s7  ;;  %p522_p12 = scmp.lt.s32.totalorder %s516_s7, %s516_s7 }
  0x41   :  { %380 = vmatpush3.bf16.msra.mxu0 %v427_v3  ;;  %400 = vmatpush3.bf16.msra.mxu1 %v436_v8 }
  0x42   :  { %381 = vmatprep.subr.bf16.mxu0 %v549_v0  ;;  %401 = vmatprep.subr.bf16.mxu1 %v549_v0  ;;  %p523_p13 = por %p522_p12, %p521_p11 }
  0x44   :  { %p524_p0 = pnand %p523_p13, %p517_p10 }
  0x45   :  { %382 = vmatpush3.bf16.msra.mxu0 %v428_v5  ;;  %402 = vmatpush3.bf16.msra.mxu1 %v437_v10 }
  0x46   :  { %383 = vmatprep.subr.bf16.mxu0 %v549_v0  ;;  %403 = vmatprep.subr.bf16.mxu1 %v549_v0 }
  0x49   :  { %384 = vmatpush3.bf16.msra.mxu0 %v429_v7  ;;  %404 = vmatpush3.bf16.msra.mxu1 %v438_v12 }
  0x4a   :  { %385 = vmatprep.subr.bf16.mxu0 %v549_v0  ;;  %405 = vmatprep.subr.bf16.mxu1 %v549_v0 }
  0x4d   :  { %386 = vmatpush3.bf16.msra.mxu0 %v430_v9  ;;  %406 = vmatpush3.bf16.msra.mxu1 %v439_v14 }
  0x4e   :  { %387 = vmatprep.subr.bf16.mxu0 %v549_v0  ;;  %407 = vmatprep.subr.bf16.mxu1 %v549_v0 }
  0x51   :  { %388 = vmatpush3.bf16.msra.mxu0 %v431_v11  ;;  %408 = vmatpush3.bf16.msra.mxu1 %v440_v16 }
  0x52   :  { %389 = vmatprep.subr.bf16.mxu0 %v549_v0  ;;  %409 = vmatprep.subr.bf16.mxu1 %v549_v0 }
  0x55   :  { %390 = vmatpush3.bf16.msra.mxu0 %v432_v13  ;;  %410 = vmatpush3.bf16.msra.mxu1 %v441_v17 }
  0x58   :  { %392 = vmatmul.mubr.bf16.vlgmr.msra.gmra.mrb[0].mxu0 %v433_v15 }
 0x12b   :  { %v176_v19 = vpop.f32.mrb[0].mxu0 }
 0x12c   :  { %v177_v20 = vadd.f32 %v338_v18, %v176_v19  ;;  %v393_v21 = vpop.f32.mrb[1].mxu0 }
 0x12d   :  { %v179_v22 = vpop.f32.mrb[2].mxu0 }
 0x12e   :  { %v180_v23 = vadd.f32 %v338_v18, %v179_v22  ;;  %v394_v24 = vpop.f32.mrb[3].mxu0  ;;  %v183_v25 = vmax.f32 %v177_v20, 0.0 }
 0x130   :  { %v184_v26 = vmax.f32 %v180_v23, 0.0 }
 0x132   :  { %v185_v27 = vpack.c.bf16 %v184_v26, %v183_v25 }
 0x134   :  { %412 = vmatmul.mubr.bf16.vlgmr.msra.gmra.mrb[0].mxu1 %v185_v27 }
 0x207   :  { %v291_v29 = vpop.f32.mrb[0].mxu1 }
 0x208   :  { %v292_v30 = vadd.f32 %v348_v28, %v291_v29  ;;  %v413_v31 = vpop.f32.mrb[1].mxu1 }
 0x209   :  { %v294_v32 = vpop.f32.mrb[2].mxu1 }
 0x20a   :  { %298 = vmax.xlane.f32.xlu0 %v292_v30  ;;  %v414_v33 = vpop.f32.mrb[3].mxu1  ;;  %v295_v34 = vadd.f32 %v348_v28, %v294_v32 }
 0x20e   :  { %300 = vmax.xlane.f32.xlu0 %v295_v34 }
 0x297   :  { %v299_v35 = vpop.xlane.xlu0 %298 }
 0x298   :  { %v302_v36 = vsub.f32 %v292_v30, %v299_v35 }
 0x29a   :  { %v304_v37 = vmul.f32 1.442695, %v302_v36 }
 0x29b   :  { %v301_v38 = vpop.xlane.xlu0 %300 }
 0x29c   :  { %v303_v39 = vsub.f32 %v295_v34, %v301_v38  ;;  %442 = vpow2.f32 %v304_v37 }
 0x29e   :  { %v306_v40 = vmul.f32 1.442695, %v303_v39 }
 0x2a0   :  { %444 = vpow2.f32 %v306_v40 }
 0x2a6   :  { %v443_v41 = vpop.eup %442 }
 0x2a7   :  { %308 = vadd.xlane.f32.xlu1 %v443_v41 }
 0x2aa   :  { %v445_v42 = vpop.eup %444 }
 0x2ab   :  { %310 = vadd.xlane.f32.xlu1 %v445_v42 }
 0x334   :  { %v309_v43 = vpop.xlane.xlu1 %308 }
 0x335   :  { %446 = vlog2.f32 %v309_v43 }
 0x338   :  { %v311_v44 = vpop.xlane.xlu1 %310 }
 0x339   :  { %448 = vlog2.f32 %v311_v44 }
 0x33f   :  { %v447_v45 = vpop.eup %446 }
 0x340   :  { %v313_v46 = vmul.f32 0.6931472, %v447_v45 }
 0x342   :  { %v316_v47 = vsub.f32 %v302_v36, %v313_v46 }
 0x343   :  { %v449_v48 = vpop.eup %448 }
 0x344   :  { %318 = vst [vmem:[#allocation8] sm:$0xff] %v316_v47  ;;  %v315_v49 = vmul.f32 0.6931472, %v449_v48 }
 0x346   :  { %v317_v50 = vsub.f32 %v303_v39, %v315_v49 }
 0x348   :  { %319 = vst [vmem:[#allocation8 + $0x8] sm:$0xff] %v317_v50 }
 0x349   :  { %527 = shalt.err (!%p524_p0)
}
 0x34a   :  { %s528_s10 = scalar_lea.hbm %s659_s5, 256 }
 0x34b   :  { %p529_p1 = scmp.ne.s32.totalorder %s659_s5, %s528_s10  ;;  %p532_p2 = scmp.lt.u32.totalorder %s528_s10, %s659_s5 }
 0x34d   :  { %p534_p3 = pnand %p532_p2, %p529_p1 }
 0x34f   :  { %537 = shalt.err (!%p534_p3)
}
 0x350   :  { %s552_s15 = smov 128   ;;  %s553_s16 = smov 8  }
 0x351   :  { %331 = dma.vmem_to_hbm [thread:$0]  %s326_s4, 256, %s659_s5, [#allocation4], %s552_s15, %s552_s15, %s553_s16  }
 0x352   :  { %542 = dma.done.wait [#allocation4], 256  }
 0x353   :  { %543 = vsyncadd [#allocation4], 4294967040 }
 0x354   :  { %335 = vsyncpa [#allocation3], 1 }
 0x355   :  { %336 = vsyncpa [#allocation6], 1 }
 0x356   :  { %337 = vsyncpa [#allocation4], 1 }

</bundles_post_ra>
